<compile_context>
chip_gen: v7x
topology: tpu7x:2x2x1
jax: 0.10.0
libtpu: 0.0.40
codegen_flags: <defaults>
</compile_context>

<pallas_src>
import functools

import jax
import jax.numpy as jnp
from jax.experimental import pallas as pl
from jax.experimental.pallas import tpu as pltpu


def _round_up(x, n):
    return (x + n - 1) // n * n


def _feature_resizer_kernel(x_ref, w_ref, b_ref, gamma_ref, beta_ref, o_ref,
                            *, c2_real, c2_pad):
    # x_ref:     (TM, C1p)   row tile (mxu dtype: bf16 or f32)
    # w_ref:     (C1p, C2p)  full weight, transposed vs. torch, zero-padded, single-buffered
    # b_ref:     (1,  C2p)   bias (f32, zero-padded)
    # gamma_ref: (1,  C2p)   LayerNorm weight (f32, zero-padded)
    # beta_ref:  (1,  C2p)   LayerNorm bias (f32, zero-padded)
    # o_ref:     (TM, C2p)   output tile (original activation dtype)

    # Linear: operands in their MXU dtype (bf16 fast path), accumulate in f32.
    y = jnp.dot(x_ref[...], w_ref[...], preferred_element_type=jnp.float32)
    y = y + b_ref[...]

    # LayerNorm over the *real* last-dim width (eps=1e-12, biased variance like torch).
    inv_c2 = 1.0 / c2_real                      # compile-time constant, no runtime divide
    mean = jnp.sum(y, axis=-1, keepdims=True) * inv_c2
    centered = y - mean

    if c2_pad != c2_real:
        # Padded channels have y == 0 (zero weight cols / zero bias) so the mean is
        # exact, but (0 - mean) would pollute the variance: mask them with a cheap
        # (1, C2p) lane mask (no full-tile iota/select).
        lane = jax.lax.broadcasted_iota(jnp.int32, (1, c2_pad), 1)
        mask = (lane < c2_real).astype(jnp.float32)
        cm = centered * mask
    else:
        cm = centered

    var = jnp.sum(cm * cm, axis=-1, keepdims=True) * inv_c2
    inv_std = jax.lax.rsqrt(var + 1e-12)

    # Dropout (eval mode) = identity.  Padded output lanes end up exactly 0
    # (gamma/beta are zero-padded) and are sliced away by the wrapper.
    o_ref[...] = (centered * (inv_std * gamma_ref[...]) + beta_ref[...]).astype(o_ref.dtype)


def prepare_feature_resizer_params(w_t, b, gamma, beta, *, mxu_dtype=jnp.bfloat16):
    """Pad/cast parameters once (hoisted out of the per-call path).

    w_t: (C1, C2) = transpose of torch nn.Linear weight.  b/gamma/beta: (C2,).
    mxu_dtype: dtype fed to the MXU for x and w (bf16 fast path by default;
               pass jnp.float32 for exact f32-matmul parity with torch).
    """
    c1, c2 = w_t.shape
    c1p = _round_up(c1, 128)
    c2p = _round_up(c2, 128)
    if mxu_dtype is None:
        mxu_dtype = w_t.dtype
    mxu_dtype = jnp.dtype(mxu_dtype)

    w_p = jnp.zeros((c1p, c2p), mxu_dtype).at[:c1, :c2].set(w_t.astype(mxu_dtype))
    b2 = jnp.zeros((1, c2p), jnp.float32).at[0, :c2].set(b.astype(jnp.float32))
    g2 = jnp.zeros((1, c2p), jnp.float32).at[0, :c2].set(gamma.astype(jnp.float32))
    be2 = jnp.zeros((1, c2p), jnp.float32).at[0, :c2].set(beta.astype(jnp.float32))

    return dict(c1=c1, c2=c2, c1p=c1p, c2p=c2p, mxu_dtype=mxu_dtype,
                w_p=w_p, b2=b2, g2=g2, be2=be2)


def feature_resizer(x, params, *, tm=1024, training=False):
    """x: (..., C1) -> (..., C2), using pre-padded params from prepare_feature_resizer_params."""
    if training:
        # TODO(synk): training-mode dropout not implemented; eval-mode forward only.
        raise NotImplementedError("FeatureResizer Pallas kernel is eval-mode only")

    c1, c2 = params["c1"], params["c2"]
    c1p, c2p = params["c1p"], params["c2p"]
    mxu_dtype = params["mxu_dtype"]
    w_p, b2, g2, be2 = params["w_p"], params["b2"], params["g2"], params["be2"]

    orig_shape = x.shape
    assert orig_shape[-1] == c1, "last dim of x must equal input_feat_size"
    out_dtype = x.dtype
    x2d = x.reshape(-1, c1)
    m = x2d.shape[0]

    # Cast to the MXU dtype and pad channels only if needed (no row-padding copy:
    # the partial last block's out-of-range rows are masked on store and LN is
    # row-wise, so they cannot contaminate real rows).
    if c1p != c1:
        x_in = jnp.zeros((m, c1p), mxu_dtype).at[:, :c1].set(x2d.astype(mxu_dtype))
    elif x2d.dtype != mxu_dtype:
        x_in = x2d.astype(mxu_dtype)
    else:
        x_in = x2d

    # Row tile: large default, rounded to the packed-sublane multiple of the MXU dtype.
    x_item = mxu_dtype.itemsize
    sub = {4: 8, 2: 16, 1: 32}.get(x_item, 8)
    tm_eff = max(sub, min(tm, _round_up(m, sub)))

    # v7x megacore: make sure the "parallel" row axis has >= 2 grid steps when M is
    # big enough that half-tiles are still a reasonable size (free on v5e/v6e).
    if pl.cdiv(m, tm_eff) < 2 and m >= 256:
        tm_eff = _round_up(pl.cdiv(m, 2), sub)

    o_item = jnp.dtype(out_dtype).itemsize
    w_item = w_p.dtype.itemsize

    def footprint(t):
        return (2 * t * c1p * x_item          # x tile, double-buffered
                + 2 * t * c2p * o_item        # out tile, double-buffered
                + 1 * c1p * c2p * w_item      # weight, single-buffered (Buffered(1))
                + 3 * c2p * 4                 # bias / gamma / beta, single-buffered
                + 4 * t * c2p * 4)            # f32 epilogue temporaries (y/centered/...)

    # Generation-aware VMEM budget: ~80% of physical per-core VMEM, with headroom.
    try:
        vmem_cap = int(pltpu.get_tpu_info().vmem_capacity_bytes)
    except Exception:
        vmem_cap = 64 * 1024 * 1024           # conservative fallback (v7x per-TC)
    budget = int(0.8 * vmem_cap)
    while footprint(tm_eff) > budget and tm_eff > sub:
        tm_eff = max(sub, _round_up(tm_eff // 2, sub))
    vmem_limit = int(min(max(footprint(tm_eff) + (4 << 20), 32 << 20), budget))

    grid = (pl.cdiv(m, tm_eff),)
    kernel = functools.partial(_feature_resizer_kernel, c2_real=c2, c2_pad=c2p)

    out = pl.pallas_call(
        kernel,
        out_shape=jax.ShapeDtypeStruct((m, c2p), out_dtype),
        grid_spec=pltpu.PrefetchScalarGridSpec(
            num_scalar_prefetch=0,
            grid=grid,
            in_specs=[
                pl.BlockSpec((tm_eff, c1p), lambda i: (i, 0)),                 # x rows tile
                pl.BlockSpec((c1p, c2p), lambda i: (0, 0),
                             pipeline_mode=pl.Buffered(1)),                    # weight (constant)
                pl.BlockSpec((1, c2p), lambda i: (0, 0),
                             pipeline_mode=pl.Buffered(1)),                    # bias
                pl.BlockSpec((1, c2p), lambda i: (0, 0),
                             pipeline_mode=pl.Buffered(1)),                    # ln gamma
                pl.BlockSpec((1, c2p), lambda i: (0, 0),
                             pipeline_mode=pl.Buffered(1)),                    # ln beta
            ],
            out_specs=pl.BlockSpec((tm_eff, c2p), lambda i: (i, 0)),
        ),
        compiler_params=pltpu.CompilerParams(
            dimension_semantics=("parallel",),
            vmem_limit_bytes=vmem_limit,
        ),
    )(x_in, w_p, b2, g2, be2)

    out = out[:, :c2]
    return out.reshape(*orig_shape[:-1], c2)


if __name__ == "__main__":
    # Small shapes: batch=2, seq=8, input_feat_size=32, output_feat_size=64
    B, S, C1, C2 = 2, 8, 32, 64

    key = jax.random.PRNGKey(0)
    kx, kw, kb, kg, kbe = jax.random.split(key, 5)

    x = jax.random.normal(kx, (B, S, C1), dtype=jnp.float32)

    # Deterministic parameter init (synthetic, not a checkpoint load).
    # nn.Linear weight is (C2, C1); we store its transpose (C1, C2).
    w_torch_layout = jax.random.normal(kw, (C2, C1), dtype=jnp.float32) * (1.0 / jnp.sqrt(C1))
    w_t = jnp.transpose(w_torch_layout)                       # (C1, C2)
    b = jax.random.normal(kb, (C2,), dtype=jnp.float32) * 0.1
    gamma = jnp.ones((C2,), dtype=jnp.float32)                # LayerNorm init
    beta = jnp.zeros((C2,), dtype=jnp.float32)

    # Pre-pad parameters once (hoisted out of the per-call path).
    params_bf16 = prepare_feature_resizer_params(w_t, b, gamma, beta,
                                                 mxu_dtype=jnp.bfloat16)
    params_f32 = prepare_feature_resizer_params(w_t, b, gamma, beta,
                                                mxu_dtype=jnp.float32)

    out_bf16 = feature_resizer(x, params_bf16)   # default bf16 MXU fast path
    out_f32 = feature_resizer(x, params_f32)     # exact f32 matmul path
    out_bf16, out_f32 = jax.block_until_ready((out_bf16, out_f32))

    # Reference in plain JAX (same semantics as torch eval forward, f32 throughout).
    y_ref = x @ w_t + b
    mu = jnp.mean(y_ref, axis=-1, keepdims=True)
    var = jnp.mean((y_ref - mu) ** 2, axis=-1, keepdims=True)
    ref = (y_ref - mu) / jnp.sqrt(var + 1e-12) * gamma + beta

    assert out_f32.shape == (B, S, C2)
    assert out_bf16.shape == (B, S, C2)
    assert jnp.max(jnp.abs(out_f32 - ref)) < 1e-4, "f32 path mismatch"
    assert jnp.max(jnp.abs(out_bf16 - ref)) < 1e-1, "bf16 path mismatch"

    print("KERNEL_OK")
</pallas_src>

<mosaic_0001>
module attributes {stable_mosaic.version = 11 : i64} {
  func.func @_feature_resizer_kernel(%arg0: i32, %arg1: memref<16x128xbf16, #tpu.memory_space<vmem>>, %arg2: memref<128x128xbf16, #tpu.memory_space<vmem>>, %arg3: memref<1x128xf32, #tpu.memory_space<vmem>>, %arg4: memref<1x128xf32, #tpu.memory_space<vmem>>, %arg5: memref<1x128xf32, #tpu.memory_space<vmem>>, %arg6: memref<16x128xf32, #tpu.memory_space<vmem>>) attributes {dimension_semantics = [#tpu.dimension_semantics<parallel>], iteration_bounds = array<i64: 1>, scalar_prefetch = 0 : i64, scratch_operands = 0 : i64, tpu.core_type = #tpu.core_type<tc>, window_params = [{transform_indices = @transform_0, window_bounds = array<i64: 16, 128>}, {pipeline_mode = #tpu.pipeline_mode<synchronous>, transform_indices = @transform_1, window_bounds = array<i64: 128, 128>}, {pipeline_mode = #tpu.pipeline_mode<synchronous>, transform_indices = @transform_2, window_bounds = array<i64: 1, 128>}, {pipeline_mode = #tpu.pipeline_mode<synchronous>, transform_indices = @transform_3, window_bounds = array<i64: 1, 128>}, {pipeline_mode = #tpu.pipeline_mode<synchronous>, transform_indices = @transform_4, window_bounds = array<i64: 1, 128>}, {transform_indices = @transform_5, window_bounds = array<i64: 16, 128>}]} {
    %c0 = arith.constant 0 : index
    %c0_0 = arith.constant 0 : index
    %0 = vector.load %arg1[%c0, %c0_0] : memref<16x128xbf16, #tpu.memory_space<vmem>>, vector<16x128xbf16>
    %c0_1 = arith.constant 0 : index
    %c0_2 = arith.constant 0 : index
    %1 = vector.load %arg2[%c0_1, %c0_2] : memref<128x128xbf16, #tpu.memory_space<vmem>>, vector<128x128xbf16>
    %cst = arith.constant dense<0.000000e+00> : vector<16x128xf32>
    %2 = tpu.matmul %0, %1, %cst {dimension_numbers = #tpu.dot_dimension_numbers<[1], [0], [0], [1], [0, 0, 1, 1], [], []>} : vector<16x128xbf16>, vector<128x128xbf16>, vector<16x128xf32> -> vector<16x128xf32>
    %c0_3 = arith.constant 0 : index
    %c0_4 = arith.constant 0 : index
    %3 = vector.load %arg3[%c0_3, %c0_4] : memref<1x128xf32, #tpu.memory_space<vmem>>, vector<1x128xf32>
    %4 = vector.broadcast %3 : vector<1x128xf32> to vector<16x128xf32>
    %5 = arith.addf %2, %4 : vector<16x128xf32>
    %cst_5 = arith.constant dense<0.000000e+00> : vector<16xf32>
    %6 = vector.multi_reduction <add>, %5, %cst_5 [1] : vector<16x128xf32> to vector<16xf32>
    %7 = vector.shape_cast %6 : vector<16xf32> to vector<16x1xf32>
    %cst_6 = arith.constant 1.562500e-02 : f32
    %8 = vector.broadcast %cst_6 : f32 to vector<16x1xf32>
    %9 = arith.mulf %7, %8 : vector<16x1xf32>
    %10 = vector.broadcast %9 : vector<16x1xf32> to vector<16x128xf32>
    %11 = arith.subf %5, %10 : vector<16x128xf32>
    %12 = tpu.iota {dimensions = array<i32: 1>} : vector<1x128xi32>
    %c64_i32 = arith.constant 64 : i32
    %13 = vector.broadcast %c64_i32 : i32 to vector<1x128xi32>
    %14 = arith.cmpi slt, %12, %13 : vector<1x128xi32>
    %15 = arith.extui %14 : vector<1x128xi1> to vector<1x128xi32>
    %16 = arith.sitofp %15 : vector<1x128xi32> to vector<1x128xf32>
    %17 = vector.broadcast %16 : vector<1x128xf32> to vector<16x128xf32>
    %18 = arith.mulf %11, %17 : vector<16x128xf32>
    %19 = arith.mulf %18, %18 : vector<16x128xf32>
    %cst_7 = arith.constant dense<0.000000e+00> : vector<16xf32>
    %20 = vector.multi_reduction <add>, %19, %cst_7 [1] : vector<16x128xf32> to vector<16xf32>
    %21 = vector.shape_cast %20 : vector<16xf32> to vector<16x1xf32>
    %cst_8 = arith.constant 1.562500e-02 : f32
    %22 = vector.broadcast %cst_8 : f32 to vector<16x1xf32>
    %23 = arith.mulf %21, %22 : vector<16x1xf32>
    %cst_9 = arith.constant 9.99999996E-13 : f32
    %24 = vector.broadcast %cst_9 : f32 to vector<16x1xf32>
    %25 = arith.addf %23, %24 : vector<16x1xf32>
    %26 = math.rsqrt %25 : vector<16x1xf32>
    %c0_10 = arith.constant 0 : index
    %c0_11 = arith.constant 0 : index
    %27 = vector.load %arg4[%c0_10, %c0_11] : memref<1x128xf32, #tpu.memory_space<vmem>>, vector<1x128xf32>
    %28 = vector.broadcast %26 : vector<16x1xf32> to vector<16x128xf32>
    %29 = vector.broadcast %27 : vector<1x128xf32> to vector<16x128xf32>
    %30 = arith.mulf %28, %29 : vector<16x128xf32>
    %31 = arith.mulf %11, %30 : vector<16x128xf32>
    %c0_12 = arith.constant 0 : index
    %c0_13 = arith.constant 0 : index
    %32 = vector.load %arg5[%c0_12, %c0_13] : memref<1x128xf32, #tpu.memory_space<vmem>>, vector<1x128xf32>
    %33 = vector.broadcast %32 : vector<1x128xf32> to vector<16x128xf32>
    %34 = arith.addf %31, %33 : vector<16x128xf32>
    %c0_14 = arith.constant 0 : index
    %c0_15 = arith.constant 0 : index
    %35 = vector.load %arg6[%c0_14, %c0_15] : memref<16x128xf32, #tpu.memory_space<vmem>>, vector<16x128xf32>
    tpu.vector_store %arg6[%c0_14, %c0_15], %34 {strides = array<i32>} : memref<16x128xf32, #tpu.memory_space<vmem>>, vector<16x128xf32>,
    return
  }
  func.func @transform_0(%arg0: i32) -> (i32, i32) {
    %c0_i32 = arith.constant 0 : i32
    %c0_i32_0 = arith.constant 0 : i32
    return %arg0, %c0_i32 : i32, i32
  }
  func.func @transform_1(%arg0: i32) -> (i32, i32) {
    %c0_i32 = arith.constant 0 : i32
    %c0_i32_0 = arith.constant 0 : i32
    %c0_i32_1 = arith.constant 0 : i32
    return %c0_i32, %c0_i32_0 : i32, i32
  }
  func.func @transform_2(%arg0: i32) -> (i32, i32) {
    %c0_i32 = arith.constant 0 : i32
    %c0_i32_0 = arith.constant 0 : i32
    %c0_i32_1 = arith.constant 0 : i32
    return %c0_i32, %c0_i32_0 : i32, i32
  }
  func.func @transform_3(%arg0: i32) -> (i32, i32) {
    %c0_i32 = arith.constant 0 : i32
    %c0_i32_0 = arith.constant 0 : i32
    %c0_i32_1 = arith.constant 0 : i32
    return %c0_i32, %c0_i32_0 : i32, i32
  }
  func.func @transform_4(%arg0: i32) -> (i32, i32) {
    %c0_i32 = arith.constant 0 : i32
    %c0_i32_0 = arith.constant 0 : i32
    %c0_i32_1 = arith.constant 0 : i32
    return %c0_i32, %c0_i32_0 : i32, i32
  }
  func.func @transform_5(%arg0: i32) -> (i32, i32) {
    %c0_i32 = arith.constant 0 : i32
    %c0_i32_0 = arith.constant 0 : i32
    return %arg0, %c0_i32 : i32, i32
  }
}

</mosaic_0001>

<bundles_post_ra>
// kernel: tpu_custom_call.1
= control target key start
LH: loop header
LB: loop body
LE: loop exit
PB: predicated region body
PF: predicated region fallthrough
CT: control target
= control target key end

     0   :  { %10 = vsyncpa [#allocation3], 0  ;;  %s457_s0 = inlined_call_operand.hbm [shape: bf16[16,128], index: 0, kind: input, shape index: {}]   ;;  %s458_s1 = inlined_call_operand.hbm [shape: bf16[128,128], index: 1, kind: input, shape index: {}]   ;;  %s459_s2 = inlined_call_operand.vmem [shape: f32[1,128], index: 2, kind: input, shape index: {}]   ;;  %s460_s3 = inlined_call_operand.vmem [shape: f32[1,128], index: 3, kind: input, shape index: {}]   ;;  %s461_s4 = inlined_call_operand.vmem [shape: f32[1,128], index: 4, kind: input, shape index: {}]   ;;  %s462_s5 = inlined_call_operand.hbm [shape: f32[16,128], index: 5, kind: output, shape index: {}]  }
   0x1   :  { %11 = vsyncpa [#allocation6], 0 }
   0x2   :  { %12 = vsyncpa [#allocation4], 0  ;;  %s373_s18 = smov [#allocation2]   ;;  %s301_s22 = scalar_lea.hbm %s457_s0, 128 }
   0x3   :  { %s18_s19 = sshll.u32 %s373_s18, 4  ;;  %p302_p0 = scmp.ne.s32.totalorder %s457_s0, %s301_s22  ;;  %s19_s19 = int_to_ptr.vmem [resolvable:$true] %s18_s19 }
   0x4   :  { %p305_p1 = scmp.lt.u32.totalorder %s301_s22, %s457_s0 }
   0x6   :  { %p307_p2 = pnand %p305_p1, %p302_p0 }
   0x8   :  { %310 = shalt.err (!%p307_p2)
}
   0x9   :  { %s311_s27 = scalar_lea.vmem %s19_s19, 128  ;;  %p316_p4 = scmp.lt.s32.totalorder %s19_s19, %s19_s19 }
   0xa   :  { %p312_p3 = scmp.ne.s32.totalorder %s19_s19, %s311_s27  ;;  %p317_p5 = scmp.lt.s32.totalorder %s311_s27, %s311_s27 }
   0xc   :  { %p318_p6 = por %p317_p5, %p316_p4 }
   0xe   :  { %p319_p7 = pnand %p318_p6, %p312_p3 }
  0x10   :  { %322 = shalt.err (!%p319_p7)
}
  0x11   :  { %s374_s28 = smov 64   ;;  %s375_s29 = smov 4  }
  0x12   :  { %24 = dma.hbm_to_vmem [thread:$0]  %s457_s0, 128, %s19_s19, [#allocation3], %s374_s28, %s374_s28, %s375_s29  }
  0x13   :  { %s376_s7 = smov [#allocation5]   ;;  %s323_s11 = scalar_lea.hbm %s458_s1, 1024 }
  0x14   :  { %s30_s8 = sshll.u32 %s376_s7, 4  ;;  %p324_p8 = scmp.ne.s32.totalorder %s458_s1, %s323_s11  ;;  %s31_s8 = int_to_ptr.vmem [resolvable:$true] %s30_s8 }
  0x15   :  { %p327_p9 = scmp.lt.u32.totalorder %s323_s11, %s458_s1 }
  0x17   :  { %p329_p10 = pnand %p327_p9, %p324_p8 }
  0x19   :  { %332 = shalt.err (!%p329_p10)
}
  0x1a   :  { %s333_s16 = scalar_lea.vmem %s31_s8, 1024  ;;  %p338_p12 = scmp.lt.s32.totalorder %s31_s8, %s31_s8 }
  0x1b   :  { %p334_p11 = scmp.ne.s32.totalorder %s31_s8, %s333_s16  ;;  %p339_p13 = scmp.lt.s32.totalorder %s333_s16, %s333_s16 }
  0x1d   :  { %p340_p0 = por %p339_p13, %p338_p12 }
  0x1f   :  { %p341_p1 = pnand %p340_p0, %p334_p11 }
  0x21   :  { %344 = shalt.err (!%p341_p1)
}
  0x22   :  { %36 = dma.hbm_to_vmem [thread:$0]  %s458_s1, 1024, %s31_s8, [#allocation6], %s374_s28, %s374_s28, %s375_s29  }
  0x23   :  { %367 = dma.done.wait [#allocation3], 128  }
  0x24   :  { %368 = vsyncadd [#allocation3], 4294967168 }
  0x25   :  { %369 = dma.done.wait [#allocation6], 1024  }
  0x26   :  { %370 = vsyncadd [#allocation6], 4294966272  ;;  %v377_v0 = vmov 0.0   ;;  %vm378_vm0 = vmmov 0   ;;  %v288_v1 = vld [vmem:[#allocation5] sm:$0xff]   ;;  %v289_v2 = vld [vmem:[#allocation5 + $0x8] sm:$0xff]   ;;  %v178_v17 = vlaneseq }
  0x27   :  { %259 = vmatprep.subr.bf16.mxu0 %v377_v0  ;;  %275 = vmatprep.mubr.msk.bf16.mxu0 %vm378_vm0, %v377_v0  ;;  %v290_v3 = vld [vmem:[#allocation5 + $0x10] sm:$0xff]   ;;  %v291_v4 = vld [vmem:[#allocation5 + $0x18] sm:$0xff]   ;;  %v292_v5 = vld [vmem:[#allocation5 + $0x20] sm:$0xff]   ;;  %s379_s22 = smov [#allocation7]  }
  0x28   :  { %260 = vmatpush3.bf16.msra.mxu0 %v288_v1  ;;  %v293_v6 = vld [vmem:[#allocation5 + $0x28] sm:$0xff]   ;;  %v294_v7 = vld [vmem:[#allocation5 + $0x30] sm:$0xff]   ;;  %v295_v8 = vld [vmem:[#allocation5 + $0x38] sm:$0xff]   ;;  %v179_v18 = vand.u32 127, %v178_v17  ;;  %s224_s23 = sshll.u32 %s379_s22, 4  ;;  %s225_s23 = int_to_ptr.vmem [resolvable:$true] %s224_s23 }
  0x29   :  { %261 = vmatprep.subr.bf16.mxu0 %v377_v0  ;;  %v296_v9 = vld [vmem:[#allocation2] sm:$0xff]   ;;  %s345_s24 = scalar_lea.vmem %s225_s23, 256  ;;  %p350_p3 = scmp.lt.s32.totalorder %s225_s23, %s225_s23 }
  0x2a   :  { %v237_v10 = vld [vmem:[%s459_s2] ss:$0 sm:$0xff]  ;;  %vm180_vm1 = vcmp.lt.s32.totalorder %v179_v18, 64  ;;  %p346_p2 = scmp.ne.s32.totalorder %s225_s23, %s345_s24  ;;  %p351_p4 = scmp.lt.s32.totalorder %s345_s24, %s345_s24 }
  0x2b   :  { %v247_v21 = vsel %vm180_vm1, 1.0, %v377_v0  ;;  %v248_v36 = vld [vmem:[%s460_s3] ss:$0 sm:$0xff] }
  0x2c   :  { %262 = vmatpush3.bf16.msra.mxu0 %v289_v2  ;;  %v249_v39 = vld [vmem:[%s461_s4] ss:$0 sm:$0xff]  ;;  %p352_p5 = por %p351_p4, %p350_p3 }
  0x2d   :  { %263 = vmatprep.subr.bf16.mxu0 %v377_v0 }
  0x2e   :  { %p353_p6 = pnand %p352_p5, %p346_p2 }
  0x30   :  { %264 = vmatpush3.bf16.msra.mxu0 %v290_v3 }
  0x31   :  { %265 = vmatprep.subr.bf16.mxu0 %v377_v0 }
  0x34   :  { %266 = vmatpush3.bf16.msra.mxu0 %v291_v4 }
  0x35   :  { %267 = vmatprep.subr.bf16.mxu0 %v377_v0 }
  0x38   :  { %268 = vmatpush3.bf16.msra.mxu0 %v292_v5 }
  0x39   :  { %269 = vmatprep.subr.bf16.mxu0 %v377_v0 }
  0x3c   :  { %270 = vmatpush3.bf16.msra.mxu0 %v293_v6 }
  0x3d   :  { %271 = vmatprep.subr.bf16.mxu0 %v377_v0 }
  0x40   :  { %272 = vmatpush3.bf16.msra.mxu0 %v294_v7 }
  0x41   :  { %273 = vmatprep.subr.bf16.mxu0 %v377_v0 }
  0x44   :  { %274 = vmatpush3.bf16.msra.mxu0 %v295_v8 }
  0x47   :  { %276 = vmatmul.mubr.bf16.vlgmr.msra.gmra.mrb[0].mxu0 %v296_v9 }
 0x11a   :  { %v163_v11 = vpop.f32.mrb[0].mxu0 }
 0x11b   :  { %v164_v12 = vadd.f32 %v237_v10, %v163_v11  ;;  %v277_v13 = vpop.f32.mrb[1].mxu0 }
 0x11c   :  { %v166_v14 = vpop.f32.mrb[2].mxu0 }
 0x11d   :  { %170 = vadd.xlane.f32.xlu0 %v164_v12  ;;  %v278_v15 = vpop.f32.mrb[3].mxu0  ;;  %v167_v16 = vadd.f32 %v237_v10, %v166_v14 }
 0x121   :  { %172 = vadd.xlane.f32.xlu0 %v167_v16 }
 0x1aa   :  { %v171_v19 = vpop.xlane.xlu0 %170 }
 0x1ab   :  { %v174_v20 = vmul.f32 0.015625, %v171_v19 }
 0x1ad   :  { %v176_v22 = vsub.f32 %v164_v12, %v174_v20 }
 0x1ae   :  { %v173_v23 = vpop.xlane.xlu0 %172 }
 0x1af   :  { %v175_v24 = vmul.f32 0.015625, %v173_v23  ;;  %v183_v25 = vmul.f32 %v247_v21, %v176_v22 }
 0x1b1   :  { %v177_v26 = vsub.f32 %v167_v16, %v175_v24  ;;  %v185_v27 = vmul.f32 %v183_v25, %v183_v25 }
 0x1b3   :  { %187 = vadd.xlane.f32.xlu1 %v185_v27  ;;  %v184_v28 = vmul.f32 %v247_v21, %v177_v26 }
 0x1b5   :  { %v186_v29 = vmul.f32 %v184_v28, %v184_v28 }
 0x1b7   :  { %189 = vadd.xlane.f32.xlu1 %v186_v29 }
 0x240   :  { %v188_v30 = vpop.xlane.xlu1 %187 }
 0x241   :  { %v191_v31 = vmul.f32 0.015625, %v188_v30 }
 0x243   :  { %v193_v32 = vadd.f32 1e-12, %v191_v31 }
 0x244   :  { %v190_v33 = vpop.xlane.xlu1 %189 }
 0x245   :  { %297 = vrsqrt.f32 %v193_v32  ;;  %v192_v34 = vmul.f32 0.015625, %v190_v33 }
 0x247   :  { %v194_v35 = vadd.f32 1e-12, %v192_v34 }
 0x249   :  { %299 = vrsqrt.f32 %v194_v35 }
 0x24f   :  { %v298_v37 = vpop.eup %297 }
 0x250   :  { %v204_v38 = vmul.f32 %v298_v37, %v248_v36 }
 0x252   :  { %v206_v40 = vmul.f32 %v204_v38, %v176_v22 }
 0x253   :  { %v300_v41 = vpop.eup %299 }
 0x254   :  { %v205_v42 = vmul.f32 %v300_v41, %v248_v36  ;;  %v215_v43 = vadd.f32 %v249_v39, %v206_v40 }
 0x256   :  { %v207_v44 = vmul.f32 %v205_v42, %v177_v26  ;;  %217 = vst [vmem:[#allocation7] sm:$0xff] %v215_v43 }
 0x258   :  { %v216_v45 = vadd.f32 %v249_v39, %v207_v44 }
 0x25a   :  { %218 = vst [vmem:[#allocation7 + $0x8] sm:$0xff] %v216_v45 }
 0x25b   :  { %356 = shalt.err (!%p353_p6)
}
 0x25c   :  { %s357_s25 = scalar_lea.hbm %s462_s5, 256 }
 0x25d   :  { %p358_p7 = scmp.ne.s32.totalorder %s462_s5, %s357_s25  ;;  %p361_p8 = scmp.lt.u32.totalorder %s357_s25, %s462_s5 }
 0x25f   :  { %p363_p9 = pnand %p361_p8, %p358_p7 }
 0x261   :  { %366 = shalt.err (!%p363_p9)
}
 0x262   :  { %s380_s30 = smov 128   ;;  %s381_s6 = smov 8  }
 0x263   :  { %230 = dma.vmem_to_hbm [thread:$0]  %s225_s23, 256, %s462_s5, [#allocation4], %s380_s30, %s380_s30, %s381_s6  }
 0x264   :  { %371 = dma.done.wait [#allocation4], 256  }
 0x265   :  { %372 = vsyncadd [#allocation4], 4294967040 }
 0x266   :  { %234 = vsyncpa [#allocation3], 1 }
 0x267   :  { %235 = vsyncpa [#allocation6], 1 }
 0x268   :  { %236 = vsyncpa [#allocation4], 1 }

</bundles_post_ra>
